<compile_context>
chip_gen: v6e
topology: v6e:2x2x1
jax: 0.10.0
libtpu: 0.0.40
codegen_flags: <defaults>
</compile_context>

<pallas_src>
import jax
import jax.numpy as jnp
from jax.experimental import pallas as pl
from jax.experimental.pallas import tpu as pltpu

_LANE = 128


def _round_up(x, m):
    return (x + m - 1) // m * m


def planar_flow_kernel(b_ref, z_ref, wp_ref, up_ref, out_ref):
    """Processes one (TB, L) lane-dense tile of packed samples.

    z_ref  : (TB, L)  f32 - P samples of width d_pad packed per 128-lane row.
    wp_ref : (L, P)   block-diagonal copies of w  (MXU per-sample reduction).
    up_ref : (P, L)   block-diagonal copies of u  (MXU broadcast/scatter).
    b_ref  : (1,)     scalar bias in SMEM.
    """
    z = z_ref[...]
    # linear[r, j] = <sample_{r,j}, w> + b   (MXU, f32 accumulation)
    linear = jnp.dot(z, wp_ref[...], preferred_element_type=jnp.float32) + b_ref[0]
    t = jnp.tanh(linear)                                                # (TB, P)  EUP
    upd = jnp.dot(t, up_ref[...], preferred_element_type=jnp.float32)  # (TB, L)  MXU
    out_ref[...] = (z.astype(jnp.float32) + upd).astype(out_ref.dtype)


def planar_flow_forward(z, w, u, b, *, block_rows=2048, donate_z=False):
    """z: (B, D), w: (D,), u: (D,), b: (1,) -> (B, D)."""
    B, D = z.shape
    dtype = z.dtype

    # ---- lane-dense packing: P samples of padded width d_pad per 128-lane row.
    if D % _LANE == 0:
        d_pad, P = D, 1
    elif D < _LANE:
        d_pad = pl.next_power_of_2(D)      # divides 128
        P = _LANE // d_pad
    else:
        d_pad = _round_up(D, _LANE)
        P = 1
    L = P * d_pad                           # multiple of 128 (lane-dense)

    # Zero-pad feature dim; zero w/u padding keeps the math exact.
    if d_pad != D:
        w_p = jnp.zeros((d_pad,), dtype).at[:D].set(w.astype(dtype))
        u_p = jnp.zeros((d_pad,), dtype).at[:D].set(u.astype(dtype))
        z_p = jnp.pad(z, ((0, 0), (0, d_pad - D)))
    else:
        w_p, u_p, z_p = w.astype(dtype), u.astype(dtype), z

    # Pad batch to a multiple of P and pack P samples per row.
    Bp = _round_up(B, P)
    if Bp != B:
        z_p = jnp.pad(z_p, ((0, Bp - B), (0, 0)))
    rows = Bp // P
    z_packed = z_p.reshape(rows, L)

    # Block-diagonal parameter matrices: both the reduction and the broadcast
    # of tanh(linear) become small MXU matmuls.
    eye = jnp.eye(P, dtype=dtype)
    w_pack = (eye[:, None, :] * w_p[None, :, None]).reshape(L, P)   # (L, P)
    u_pack = (eye[:, :, None] * u_p[None, None, :]).reshape(P, L)   # (P, L)

    # Batch tiling: 2048 rows x 128 lanes x 4 B = 1 MiB per tile; with
    # double-buffered z + out tiles that is ~4 MiB of VMEM -> safe on
    # v5e/v6e (128 MiB) and v7x (64 MiB). Partial final block is allowed.
    tb = min(block_rows, rows)
    grid = (pl.cdiv(rows, tb),)

    out_packed = pl.pallas_call(
        planar_flow_kernel,
        out_shape=jax.ShapeDtypeStruct((rows, L), dtype),
        grid=grid,
        in_specs=[
            pl.BlockSpec(memory_space=pltpu.SMEM),       # b (scalar)
            pl.BlockSpec((tb, L), lambda i: (i, 0)),     # z tile (pipelined)
            pl.BlockSpec((L, P), lambda i: (0, 0)),      # w_pack (resident)
            pl.BlockSpec((P, L), lambda i: (0, 0)),      # u_pack (resident)
        ],
        out_specs=pl.BlockSpec((tb, L), lambda i: (i, 0)),
        compiler_params=pltpu.CompilerParams(
            dimension_semantics=("parallel",)),          # megacore / v7x 2 TCs
        input_output_aliases=({1: 0} if donate_z else {}),
    )(b.astype(dtype).reshape(1), z_packed, w_pack, u_pack)

    return out_packed.reshape(Bp, d_pad)[:B, :D]


def _reference(z, w, u, b):
    linear = jnp.sum(z * w[None, :], axis=-1) + b[0]
    return z + u[None, :] * jnp.tanh(linear)[:, None]


if __name__ == "__main__":
    key = jax.random.PRNGKey(0)
    k_z, k_u, k_w, k_b, k_z2, k_u2, k_w2 = jax.random.split(key, 7)

    # Small shapes consistent with the module: batch=8, z_dim=32.
    B, Z_DIM = 8, 32
    u = jax.random.normal(k_u, (Z_DIM,), dtype=jnp.float32)
    w = jax.random.normal(k_w, (Z_DIM,), dtype=jnp.float32)
    b = jax.random.normal(k_b, (1,), dtype=jnp.float32)
    z = jax.random.normal(k_z, (B, Z_DIM), dtype=jnp.float32)

    f_z = jax.block_until_ready(planar_flow_forward(z, w, u, b))
    assert f_z.shape == (B, Z_DIM)
    assert jnp.allclose(f_z, _reference(z, w, u, b), atol=1e-4, rtol=1e-4)

    # Larger case exercising the tiled multi-block path, feature padding
    # (D=48 -> d_pad=64, P=2) and a partial last grid block.
    B2, D2 = 10000, 48
    z2 = jax.random.normal(k_z2, (B2, D2), dtype=jnp.float32)
    u2 = jax.random.normal(k_u2, (D2,), dtype=jnp.float32)
    w2 = jax.random.normal(k_w2, (D2,), dtype=jnp.float32)
    f_z2 = jax.block_until_ready(planar_flow_forward(z2, w2, u2, b, block_rows=2048))
    assert f_z2.shape == (B2, D2)
    assert jnp.allclose(f_z2, _reference(z2, w2, u2, b), atol=1e-4, rtol=1e-4)

    # TODO(synk): inverse() raises NotImplementedError in the reference module,
    # so no kernel is provided for it.
    print("KERNEL_OK")
</pallas_src>

<mosaic_0001>
module attributes {stable_mosaic.version = 11 : i64} {
  func.func @planar_flow_kernel(%arg0: i32, %arg1: memref<1xf32, #tpu.memory_space<smem>>, %arg2: memref<2x128xf32, #tpu.memory_space<vmem>>, %arg3: memref<128x4xf32, #tpu.memory_space<vmem>>, %arg4: memref<4x128xf32, #tpu.memory_space<vmem>>, %arg5: memref<2x128xf32, #tpu.memory_space<vmem>>) attributes {dimension_semantics = [#tpu.dimension_semantics<parallel>], iteration_bounds = array<i64: 1>, scalar_prefetch = 0 : i64, scratch_operands = 0 : i64, tpu.core_type = #tpu.core_type<tc>, window_params = [{transform_indices = @transform_0, window_bounds = array<i64: 1>}, {transform_indices = @transform_1, window_bounds = array<i64: 2, 128>}, {pipeline_mode = #tpu.pipeline_mode<synchronous>, transform_indices = @transform_2, window_bounds = array<i64: 128, 4>}, {pipeline_mode = #tpu.pipeline_mode<synchronous>, transform_indices = @transform_3, window_bounds = array<i64: 4, 128>}, {transform_indices = @transform_4, window_bounds = array<i64: 2, 128>}]} {
    %c0 = arith.constant 0 : index
    %c0_0 = arith.constant 0 : index
    %0 = vector.load %arg2[%c0, %c0_0] : memref<2x128xf32, #tpu.memory_space<vmem>>, vector<2x128xf32>
    %c0_1 = arith.constant 0 : index
    %c0_2 = arith.constant 0 : index
    %1 = vector.load %arg3[%c0_1, %c0_2] : memref<128x4xf32, #tpu.memory_space<vmem>>, vector<128x4xf32>
    %cst = arith.constant dense<0.000000e+00> : vector<2x4xf32>
    %2 = tpu.matmul %0, %1, %cst {dimension_numbers = #tpu.dot_dimension_numbers<[1], [0], [0], [1], [0, 0, 1, 1], [], []>} : vector<2x128xf32>, vector<128x4xf32>, vector<2x4xf32> -> vector<2x4xf32>
    %c0_3 = arith.constant 0 : index
    %3 = memref.load %arg1[%c0_3] : memref<1xf32, #tpu.memory_space<smem>>
    %4 = vector.broadcast %3 : f32 to vector<2x4xf32>
    %5 = arith.addf %2, %4 : vector<2x4xf32>
    %6 = math.tanh %5 : vector<2x4xf32>
    %c0_4 = arith.constant 0 : index
    %c0_5 = arith.constant 0 : index
    %7 = vector.load %arg4[%c0_4, %c0_5] : memref<4x128xf32, #tpu.memory_space<vmem>>, vector<4x128xf32>
    %cst_6 = arith.constant dense<0.000000e+00> : vector<2x128xf32>
    %8 = tpu.matmul %6, %7, %cst_6 {dimension_numbers = #tpu.dot_dimension_numbers<[1], [0], [0], [1], [0, 0, 1, 1], [], []>} : vector<2x4xf32>, vector<4x128xf32>, vector<2x128xf32> -> vector<2x128xf32>
    %9 = arith.addf %0, %8 : vector<2x128xf32>
    %c0_7 = arith.constant 0 : index
    %c0_8 = arith.constant 0 : index
    %10 = vector.load %arg5[%c0_7, %c0_8] : memref<2x128xf32, #tpu.memory_space<vmem>>, vector<2x128xf32>
    tpu.vector_store %arg5[%c0_7, %c0_8], %9 {strides = array<i32>} : memref<2x128xf32, #tpu.memory_space<vmem>>, vector<2x128xf32>,
    return
  }
  func.func @transform_0(%arg0: i32) -> i32 {
    %c0_i32 = arith.constant 0 : i32
    %c0_i32_0 = arith.constant 0 : i32
    return %c0_i32 : i32
  }
  func.func @transform_1(%arg0: i32) -> (i32, i32) {
    %c0_i32 = arith.constant 0 : i32
    %c0_i32_0 = arith.constant 0 : i32
    return %arg0, %c0_i32 : i32, i32
  }
  func.func @transform_2(%arg0: i32) -> (i32, i32) {
    %c0_i32 = arith.constant 0 : i32
    %c0_i32_0 = arith.constant 0 : i32
    %c0_i32_1 = arith.constant 0 : i32
    return %c0_i32, %c0_i32_0 : i32, i32
  }
  func.func @transform_3(%arg0: i32) -> (i32, i32) {
    %c0_i32 = arith.constant 0 : i32
    %c0_i32_0 = arith.constant 0 : i32
    %c0_i32_1 = arith.constant 0 : i32
    return %c0_i32, %c0_i32_0 : i32, i32
  }
  func.func @transform_4(%arg0: i32) -> (i32, i32) {
    %c0_i32 = arith.constant 0 : i32
    %c0_i32_0 = arith.constant 0 : i32
    return %arg0, %c0_i32 : i32, i32
  }
}

</mosaic_0001>

<bundles_post_ra>
// kernel: tpu_custom_call.1
= control target key start
LH: loop header
LB: loop body
LE: loop exit
PB: predicated region body
PF: predicated region fallthrough
CT: control target
= control target key end

     0   :  { %v292_v1 = vmov 0.0   ;;  %vm293_vm0 = vmmov 0   ;;  %s380_s0 = inlined_call_operand.<no memory space> [shape: f32[1], index: 0, kind: input, shape index: {}]   ;;  %s381_s1 = inlined_call_operand.vmem [shape: f32[2,128], index: 1, kind: input, shape index: {}]   ;;  %s382_s2 = inlined_call_operand.vmem [shape: f32[128,4], index: 2, kind: input, shape index: {}]   ;;  %s383_s3 = inlined_call_operand.vmem [shape: f32[4,128], index: 3, kind: input, shape index: {}]   ;;  %s384_s4 = inlined_call_operand.hbm [shape: f32[2,128], index: 4, kind: output, shape index: {}]  }
   0x1   :  { %v35_v0 = vld [vmem:[%s382_s2 + $0x78] sm:$0xff]  ;;  %225 = vmatprep.subr.mxu0 %v292_v1  ;;  %v34_v2 = vld [vmem:[%s382_s2 + $0x70] sm:$0xff]  ;;  %257 = vmatprep.mubr.msk.f32.mxu0 %vm293_vm0, %v292_v1  ;;  %v33_v3 = vld [vmem:[%s382_s2 + $0x68] sm:$0xff] }
   0x2   :  { %226 = vmatpush3.msra.mxu0 %v35_v0  ;;  %260 = vmatprep.subr.mxu1 %v292_v1  ;;  %v32_v4 = vld [vmem:[%s382_s2 + $0x60] sm:$0xff] }
   0x3   :  { %227 = vmatprep.subr.mxu0 %v292_v1  ;;  %262 = vmatprep.mubr.msk.f32.mxu1 %vm293_vm0, %v292_v1 }
   0x4   :  { %228 = vmatpush3.msra.mxu0 %v34_v2 }
   0x5   :  { %229 = vmatprep.subr.mxu0 %v292_v1 }
   0x6   :  { %10 = vsyncpa [#allocation4], 0  ;;  %230 = vmatpush3.msra.mxu0 %v33_v3  ;;  %v31_v5 = vld [vmem:[%s382_s2 + $0x58] sm:$0xff]  ;;  %v30_v6 = vld [vmem:[%s382_s2 + $0x50] sm:$0xff]  ;;  %vm114_vm1 = vcmask 1043456   ;;  %v37_v19 = vstv %s380_s0  ;;  %vm110_vm2 = vcmask 31744  }
   0x7   :  { %231 = vmatprep.subr.mxu0 %v292_v1  ;;  %v29_v7 = vld [vmem:[%s382_s2 + $0x48] sm:$0xff]  ;;  %v28_v8 = vld [vmem:[%s382_s2 + $0x40] sm:$0xff]  ;;  %v27_v9 = vld [vmem:[%s382_s2 + $0x38] sm:$0xff] }
   0x8   :  { %232 = vmatpush3.msra.mxu0 %v32_v4  ;;  %v26_v10 = vld [vmem:[%s382_s2 + $0x30] sm:$0xff]  ;;  %v25_v11 = vld [vmem:[%s382_s2 + $0x28] sm:$0xff]  ;;  %v24_v12 = vld [vmem:[%s382_s2 + $0x20] sm:$0xff] }
   0x9   :  { %233 = vmatprep.subr.mxu0 %v292_v1  ;;  %v23_v13 = vld [vmem:[%s382_s2 + $0x18] sm:$0xff]  ;;  %v22_v14 = vld [vmem:[%s382_s2 + $0x10] sm:$0xff]  ;;  %v21_v15 = vld [vmem:[%s382_s2 + $0x8] sm:$0xff] }
   0xa   :  { %234 = vmatpush3.msra.mxu0 %v31_v5  ;;  %v20_v16 = vld [vmem:[%s382_s2] sm:$0xff] }
   0xb   :  { %235 = vmatprep.subr.mxu0 %v292_v1  ;;  %v19_v17 = vld [vmem:[%s381_s1] sm:$0x3]  ;;  %s294_s1 = smov [#allocation3]  }
   0xc   :  { %236 = vmatpush3.msra.mxu0 %v30_v6  ;;  %v109_v18 = vld [vmem:[%s383_s3] sm:$0xf]  ;;  %s196_s2 = sshll.u32 %s294_s1, 4  ;;  %s197_s2 = int_to_ptr.vmem [resolvable:$true] %s196_s2 }
   0xd   :  { %237 = vmatprep.subr.mxu0 %v292_v1  ;;  %261 = vmatpush3.msk.msra.mxu1 %vm114_vm1, %v109_v18  ;;  %s270_s3 = scalar_lea.vmem %s197_s2, 32  ;;  %p275_p1 = scmp.lt.s32.totalorder %s197_s2, %s197_s2 }
   0xe   :  { %238 = vmatpush3.msra.mxu0 %v29_v7  ;;  %p271_p0 = scmp.ne.s32.totalorder %s197_s2, %s270_s3  ;;  %p276_p2 = scmp.lt.s32.totalorder %s270_s3, %s270_s3 }
   0xf   :  { %239 = vmatprep.subr.mxu0 %v292_v1 }
  0x10   :  { %240 = vmatpush3.msra.mxu0 %v28_v8  ;;  %p277_p3 = por %p276_p2, %p275_p1 }
  0x11   :  { %241 = vmatprep.subr.mxu0 %v292_v1 }
  0x12   :  { %242 = vmatpush3.msra.mxu0 %v27_v9  ;;  %p278_p4 = pnand %p277_p3, %p271_p0 }
  0x13   :  { %243 = vmatprep.subr.mxu0 %v292_v1 }
  0x14   :  { %244 = vmatpush3.msra.mxu0 %v26_v10 }
  0x15   :  { %245 = vmatprep.subr.mxu0 %v292_v1 }
  0x16   :  { %246 = vmatpush3.msra.mxu0 %v25_v11 }
  0x17   :  { %247 = vmatprep.subr.mxu0 %v292_v1 }
  0x18   :  { %248 = vmatpush3.msra.mxu0 %v24_v12 }
  0x19   :  { %249 = vmatprep.subr.mxu0 %v292_v1 }
  0x1a   :  { %250 = vmatpush3.msra.mxu0 %v23_v13 }
  0x1b   :  { %251 = vmatprep.subr.mxu0 %v292_v1 }
  0x1c   :  { %252 = vmatpush3.msra.mxu0 %v22_v14 }
  0x1d   :  { %253 = vmatprep.subr.mxu0 %v292_v1 }
  0x1e   :  { %254 = vmatpush3.msra.mxu0 %v21_v15 }
  0x1f   :  { %255 = vmatprep.subr.mxu0 %v292_v1 }
  0x20   :  { %256 = vmatpush3.msra.mxu0 %v20_v16 }
  0x21   :  { %258 = vmatmul.mubr.f32.vlgmr.msra.gmra.mxu0 %v19_v17 }
  0xe1   :  { %v104_v20 = vpop.f32.mrf.mxu0 }
  0xe2   :  { %v105_v21 = vadd.f32 %v104_v20, %v37_v19 }
  0xe3   :  { %v259_v22 = vpop.f32.mrf.mxu0 }
  0xe4   :  { %268 = vtanh.f32 %v105_v21 }
  0xf1   :  { %v269_v23 = vpop.eup %268 }
  0xf2   :  { %263 = vmatmul.mubr.msk.f32.vlgmr.msra.gmra.mxu1 %vm110_vm2, %v269_v23 }
 0x1b2   :  { %v184_v24 = vpop.f32.mrf.mxu1 }
 0x1b3   :  { %v188_v25 = vadd.f32 %v184_v24, %v19_v17 }
 0x1b4   :  { %v264_v26 = vpop.f32.mrf.mxu1 }
 0x1b5   :  { %189 = vst [vmem:[#allocation3] sm:$0x3] %v188_v25 }
 0x1b6   :  { %281 = shalt.err (!%p278_p4)
}
 0x1b7   :  { %199 = dma.vmem_to_hbm [thread:$0]  %s197_s2, 32, %s384_s4, [#allocation4]  }
 0x1b8   :  { %290 = dma.done.wait [#allocation4], 32  }
 0x1b9   :  { %291 = vsyncadd [#allocation4], 4294967264 }
 0x1ba   :  { %203 = vsyncpa [#allocation4], 1 }

</bundles_post_ra>
